<compile_context>
chip_gen: v5e
topology: v5e:2x2
jax: 0.10.0
libtpu: 0.0.40
codegen_flags: <defaults>
</compile_context>

<pallas_src>
import numpy as np
import jax
import jax.numpy as jnp
from jax.experimental import pallas as pl
from jax.experimental.pallas import tpu as pltpu

POOL_SIZES = (1, 2, 3, 6)
_KK_SIZES = tuple(k * k for k in POOL_SIZES)                      # (1, 4, 9, 36)
_KK_OFFSETS = (0,) + tuple(np.cumsum(_KK_SIZES)[:-1].tolist())    # (0, 1, 5, 14)
KK_TOTAL = int(sum(_KK_SIZES))                                    # 50


# ------------------------------- Pallas kernel -------------------------------
def _pyramid_kernel(x_ref, pT_ref, wT_ref, mask_ref, bmask_ref, uT_ref,
                    out_ref, pooled_acc, act_scr):
    """Two-phase, HW-tiled fused pyramid pooling.

    x_ref    : (1, C_in, THW)  f32   current HW tile of the input image
    pT_ref   : (THW, KK)       bf16  pooling-matrix tile (transposed)
    wT_ref   : (C4, C_in)      bf16  stacked 1x1-conv weights, BN folded (VMEM resident)
    mask_ref : (C4, KK)        f32   block-diagonal branch mask (VMEM resident)
    bmask_ref: (C4, KK)        f32   bias * mask, pre-broadcast (VMEM resident)
    uT_ref   : (KK, THW)       bf16  upsample-matrix tile (transposed)
    out_ref  : (1, C_in, THW)        phase 0 -> identity channels, phase 1 -> feat channels
    pooled_acc : (C_in, KK) f32 scratch (pooling accumulator, per image)
    act_scr    : (C4, KK)  bf16 scratch (post-ReLU activations, per image)
    """
    phase = pl.program_id(1)
    t = pl.program_id(2)

    @pl.when(phase == 0)
    def _pool_and_passthrough():
        @pl.when(t == 0)
        def _():
            pooled_acc[...] = jnp.zeros_like(pooled_acc)

        x = x_ref[0]                                     # (C_in, THW) f32
        # Identity pass-through of this tile (lane-dense store, exact f32).
        out_ref[0] = x.astype(out_ref.dtype)
        # Partial adaptive-avg-pool for all 4 scales: (C_in, THW) @ (THW, KK).
        pooled_acc[...] += jnp.dot(x.astype(jnp.bfloat16), pT_ref[...],
                                   preferred_element_type=jnp.float32)

    @pl.when(phase == 1)
    def _conv_and_upsample():
        @pl.when(t == 0)
        def _():
            # All four 1x1 convs (+ folded BN) in one matmul, once per image.
            conv = jnp.dot(wT_ref[...], pooled_acc[...].astype(jnp.bfloat16),
                           preferred_element_type=jnp.float32)
            # mask in {0,1}:  mask * relu(conv + b) == relu(mask*conv + mask*b)
            act = jnp.maximum(conv * mask_ref[...] + bmask_ref[...], 0.0)
            act_scr[...] = act.astype(jnp.bfloat16)

        # Bilinear upsample of all 4 branches for this tile: (C4, KK) @ (KK, THW).
        feat = jnp.dot(act_scr[...], uT_ref[...],
                       preferred_element_type=jnp.float32)
        out_ref[0] = feat.astype(out_ref.dtype)


# ------------------------------- host helpers ---------------------------------
def _pool_matrix_1d(in_size, k):
    """AdaptiveAvgPool1d averaging matrix, shape (k, in_size)."""
    m = np.zeros((k, in_size), np.float32)
    for i in range(k):
        start = (i * in_size) // k
        end = -(-((i + 1) * in_size) // k)  # ceil
        m[i, start:end] = 1.0 / float(end - start)
    return m


def _upsample_matrix_1d(out_size, in_size):
    """Bilinear (align_corners=False) interpolation matrix (out_size, in_size)."""
    if in_size == 1:
        return np.ones((out_size, 1), np.float32)
    scale = in_size / out_size
    m = np.zeros((out_size, in_size), np.float32)
    for d in range(out_size):
        src = max(scale * (d + 0.5) - 0.5, 0.0)
        i0 = min(int(np.floor(src)), in_size - 1)
        i1 = min(i0 + 1, in_size - 1)
        frac = src - float(i0)
        m[d, i0] += 1.0 - frac
        m[d, i1] += frac
    return m


def _build_pool_upsample(h, w):
    """Stacked pool / upsample matrices for all 4 scales: (KK, HW), (HW, KK)."""
    p_blocks, u_blocks = [], []
    for k in POOL_SIZES:
        p_blocks.append(np.kron(_pool_matrix_1d(h, k), _pool_matrix_1d(w, k)))
        u_blocks.append(np.kron(_upsample_matrix_1d(h, k),
                                _upsample_matrix_1d(w, k)))
    p_all = np.concatenate(p_blocks, axis=0).astype(np.float32)   # (KK, HW)
    u_all = np.concatenate(u_blocks, axis=1).astype(np.float32)   # (HW, KK)
    return p_all, u_all


def make_params(key, in_channels):
    """Deterministic conv+BN params per branch, BN folded into (W_eff, b_eff)."""
    c_out = in_channels // 4
    eps = 1e-5
    params = []
    for _ in POOL_SIZES:
        key, k1, k2, k3, k4 = jax.random.split(key, 5)
        w = jax.random.normal(k1, (c_out, in_channels), jnp.float32) * 0.1
        b = jax.random.normal(k2, (c_out,), jnp.float32) * 0.1
        gamma = 1.0 + 0.1 * jax.random.normal(k3, (c_out,), jnp.float32)
        beta = 0.1 * jax.random.normal(k4, (c_out,), jnp.float32)
        # eval-mode BN with running_mean=0, running_var=1
        scale = gamma / jnp.sqrt(1.0 + eps)
        w_eff = (w * scale[:, None]).T          # (C_in, C_out)
        b_eff = b * scale + beta                # (C_out,)
        params.append((w_eff, b_eff))
    return params


# ------------------------------- wrapper ---------------------------------------
def pyramid_pooling(x_nchw, params, tile_hw=None):
    """x_nchw: (N, C, H, W) -> (N, 2*C, H, W), matching the PyTorch module."""
    n, c_in, h, w = x_nchw.shape
    assert c_in % 4 == 0, "in_channels must be divisible by 4"
    c_out = c_in // 4
    c4 = 4 * c_out                              # == c_in
    hw = h * w

    # HW tiling: pad the flattened spatial axis to a multiple of the tile
    # (>=128 lanes) so all stores are unmasked and the grid divides evenly.
    if tile_hw is None:
        # 512-lane tiles are sized for v7x's 64 MiB VMEM; raise to 1024-2048 on
        # v6e / v5e (128 MiB) to amortize per-grid-step overhead.
        tile_hw = 512
    hw128 = -(-hw // 128) * 128
    tile_hw = max(128, (tile_hw // 128) * 128)
    tile_hw = min(tile_hw, hw128)
    num_tiles = -(-hw // tile_hw)
    hw_pad = num_tiles * tile_hw
    last = num_tiles - 1

    # ---- host-built constants --------------------------------------------
    p_all, u_all = _build_pool_upsample(h, w)         # (KK, HW), (HW, KK)
    if hw_pad > hw:
        p_all = np.pad(p_all, ((0, 0), (0, hw_pad - hw)))   # zero cols: pad x ignored
        u_all = np.pad(u_all, ((0, hw_pad - hw), (0, 0)))   # zero rows: pad out = 0
    pT = jnp.asarray(np.ascontiguousarray(p_all.T), jnp.bfloat16)   # (HW_pad, KK)
    uT = jnp.asarray(np.ascontiguousarray(u_all.T), jnp.bfloat16)   # (KK, HW_pad)

    w_all = jnp.concatenate([p[0] for p in params], axis=1)         # (C_in, C4)
    b_all = jnp.concatenate([p[1] for p in params], axis=0)         # (C4,)
    wT = w_all.T.astype(jnp.bfloat16)                               # (C4, C_in)

    # Block-diagonal branch mask and pre-broadcast masked bias (host constants;
    # replaces the in-kernel iota/compare chain and the (C4,1) lane broadcast).
    mask_np = np.zeros((c4, KK_TOTAL), np.float32)
    for s in range(len(POOL_SIZES)):
        off, kk = _KK_OFFSETS[s], _KK_SIZES[s]
        mask_np[s * c_out:(s + 1) * c_out, off:off + kk] = 1.0
    mask = jnp.asarray(mask_np)                                     # (C4, KK) f32
    bmask = b_all[:, None].astype(jnp.float32) * mask               # (C4, KK) f32

    x_flat = x_nchw.reshape(n, c_in, hw)        # channels-major, no transpose
    if hw_pad > hw:
        x_flat = jnp.pad(x_flat, ((0, 0), (0, 0), (0, hw_pad - hw)))

    # VMEM budget: double-buffered x/out/pT/uT tiles + resident constants + scratch.
    vmem_need = (
        2 * 2 * c_in * tile_hw * 4              # x + out tiles, double-buffered
        + 2 * tile_hw * 128 * 2                 # pT tile (KK lane-padded), dbl-buf
        + 2 * 64 * tile_hw * 2                  # uT tile (KK sublane-padded), dbl-buf
        + c4 * c_in * 2                         # wT resident (single copy)
        + 2 * c4 * 128 * 4                      # mask + bmask resident
        + c_in * 128 * 4 + c4 * 128 * 2         # pooled / act scratches
    )
    vmem_limit = int(min(max(2 * vmem_need, 32 * 1024 * 1024), 96 * 1024 * 1024))

    flops = 2 * n * (c_in * hw_pad * KK_TOTAL        # pooling matmuls
                     + c4 * c_in * KK_TOTAL          # fused 1x1 conv matmul
                     + c4 * KK_TOTAL * hw_pad)       # upsample matmuls
    bytes_accessed = (4 * n * hw_pad * 3 * c_in                      # x read + out write
                      + 2 * (2 * hw_pad * KK_TOTAL + c4 * c_in)      # bf16 constants
                      + 4 * 2 * c4 * KK_TOTAL)                       # mask + bias

    out = pl.pallas_call(
        _pyramid_kernel,
        out_shape=jax.ShapeDtypeStruct((n, 2 * c_in, hw_pad), x_nchw.dtype),
        grid_spec=pltpu.PrefetchScalarGridSpec(
            num_scalar_prefetch=0,
            grid=(n, 2, num_tiles),
            in_specs=[
                # x: tile t in phase 0; pinned to the last tile in phase 1 so it
                # is never re-fetched (x read exactly once).
                pl.BlockSpec((1, c_in, tile_hw),
                             lambda i, p, t: (i, 0, (1 - p) * t + p * last)),
                # pooling matrix tile, only advances during phase 0
                pl.BlockSpec((tile_hw, KK_TOTAL),
                             lambda i, p, t: ((1 - p) * t + p * last, 0)),
                # Resident (single-buffered) constants: whole arrays live in VMEM.
                pl.BlockSpec(memory_space=pltpu.MemorySpace.VMEM),   # wT
                pl.BlockSpec(memory_space=pltpu.MemorySpace.VMEM),   # mask
                pl.BlockSpec(memory_space=pltpu.MemorySpace.VMEM),   # bmask
                # upsample matrix tile, only advances during phase 1
                pl.BlockSpec((KK_TOTAL, tile_hw), lambda i, p, t: (0, p * t)),
            ],
            # The phase selects which channel half of the output this step writes:
            # phase 0 -> [0, C_in) identity, phase 1 -> [C_in, 2*C_in) pyramid feats.
            out_specs=pl.BlockSpec((1, c_in, tile_hw), lambda i, p, t: (i, p, t)),
            scratch_shapes=[
                pltpu.VMEM((c_in, KK_TOTAL), jnp.float32),   # pooled accumulator
                pltpu.VMEM((c4, KK_TOTAL), jnp.bfloat16),    # activations (per image)
            ],
        ),
        compiler_params=pltpu.CompilerParams(
            # Batch is parallel (megacore / 2-TC v7x for N>=2).  Phase and tile
            # must stay sequential: phase 1 consumes the pooled accumulator
            # produced over all phase-0 tiles.
            dimension_semantics=("parallel", "arbitrary", "arbitrary"),
            vmem_limit_bytes=vmem_limit,
        ),
        cost_estimate=pl.CostEstimate(flops=int(flops), transcendentals=0,
                                      bytes_accessed=int(bytes_accessed)),
    )(x_flat, pT, wT, mask, bmask, uT)

    if hw_pad > hw:
        out = out[:, :, :hw]
    return out.reshape(n, 2 * c_in, h, w)


# Pure-JAX f32 reference (same math, per-branch) for the self-test.
def pyramid_pooling_reference(x_nchw, params):
    n, c_in, h, w = x_nchw.shape
    hw = h * w
    p_all, u_all = _build_pool_upsample(h, w)
    x_flat = x_nchw.reshape(n, c_in, hw)
    feats = [x_flat]
    for s in range(len(POOL_SIZES)):
        off, kk = _KK_OFFSETS[s], _KK_SIZES[s]
        p_s = jnp.asarray(p_all[off:off + kk])        # (kk, hw)
        u_s = jnp.asarray(u_all[:, off:off + kk])     # (hw, kk)
        w_eff, b_eff = params[s]
        pooled = jnp.einsum('nch,kh->nck', x_flat, p_s)
        conv = jnp.einsum('nck,co->nok', pooled, w_eff) + b_eff[None, :, None]
        act = jnp.maximum(conv, 0.0)
        feat = jnp.einsum('nok,hk->noh', act, u_s)
        feats.append(feat)
    return jnp.concatenate(feats, axis=1).reshape(n, -1, h, w)


# ---------------------------------- main --------------------------------------
if __name__ == "__main__":
    key = jax.random.PRNGKey(0)
    kx, kp = jax.random.split(key)

    N, C, H, W = 2, 16, 16, 16          # NCHW input, like the PyTorch module
    x = jax.random.normal(kx, (N, C, H, W), jnp.float32)
    params = make_params(kp, C)

    # tile_hw=128 forces 2 spatial tiles -> exercises the two-phase
    # pool-accumulate / upsample-write path.
    out = pyramid_pooling(x, params, tile_hw=128)
    out = jax.block_until_ready(out)

    assert out.shape == (N, 2 * C, H, W), out.shape
    out_np = np.asarray(out)
    # first C channels are the identity pass-through of x (copied in f32 -> exact)
    np.testing.assert_allclose(out_np[:, :C], np.asarray(x), rtol=1e-6, atol=1e-6)
    # full check against a pure-JAX f32 reference (kernel matmuls run in bf16)
    ref = np.asarray(pyramid_pooling_reference(x, params))
    np.testing.assert_allclose(out_np, ref, rtol=5e-2, atol=5e-2)
    assert np.isfinite(out_np).all()

    print("KERNEL_OK")
</pallas_src>

<mosaic_0001>
module attributes {stable_mosaic.version = 11 : i64} {
  func.func @_pyramid_kernel(%arg0: i32, %arg1: i32, %arg2: i32, %arg3: memref<1x16x128xf32, #tpu.memory_space<vmem>>, %arg4: memref<128x50xbf16, #tpu.memory_space<vmem>>, %arg5: memref<16x16xbf16, #tpu.memory_space<vmem>>, %arg6: memref<16x50xf32, #tpu.memory_space<vmem>>, %arg7: memref<16x50xf32, #tpu.memory_space<vmem>>, %arg8: memref<50x128xbf16, #tpu.memory_space<vmem>>, %arg9: memref<1x16x128xf32, #tpu.memory_space<vmem>>, %arg10: memref<16x50xf32, #tpu.memory_space<vmem>>, %arg11: memref<16x50xbf16, #tpu.memory_space<vmem>>) attributes {dimension_semantics = [#tpu.dimension_semantics<parallel>, #tpu.dimension_semantics<arbitrary>, #tpu.dimension_semantics<arbitrary>], iteration_bounds = array<i64: 2, 2, 2>, scalar_prefetch = 0 : i64, scratch_operands = 2 : i64, tpu.core_type = #tpu.core_type<tc>, window_params = [{transform_indices = @transform_0, window_bounds = array<i64: 1, 16, 128>}, {transform_indices = @transform_1, window_bounds = array<i64: 128, 50>}, {pipeline_mode = #tpu.pipeline_mode<synchronous>, transform_indices = @transform_2, window_bounds = array<i64: 16, 16>}, {pipeline_mode = #tpu.pipeline_mode<synchronous>, transform_indices = @transform_3, window_bounds = array<i64: 16, 50>}, {pipeline_mode = #tpu.pipeline_mode<synchronous>, transform_indices = @transform_4, window_bounds = array<i64: 16, 50>}, {transform_indices = @transform_5, window_bounds = array<i64: 50, 128>}, {transform_indices = @transform_6, window_bounds = array<i64: 1, 16, 128>}]} {
    %c0_i32 = arith.constant 0 : i32
    %0 = arith.cmpi eq, %arg1, %c0_i32 : i32
    %1 = arith.extui %0 : i1 to i32
    %c0_i32_0 = arith.constant 0 : i32
    %2 = arith.cmpi ne, %1, %c0_i32_0 : i32
    scf.if %2 {
      %c0_i32_2 = arith.constant 0 : i32
      %6 = arith.cmpi eq, %arg2, %c0_i32_2 : i32
      %7 = arith.extui %6 : i1 to i32
      %c0_i32_3 = arith.constant 0 : i32
      %8 = arith.cmpi ne, %7, %c0_i32_3 : i32
      scf.if %8 {
        %cst_15 = arith.constant 0.000000e+00 : f32
        %20 = vector.broadcast %cst_15 : f32 to vector<16x50xf32>
        %c0_16 = arith.constant 0 : index
        %c0_17 = arith.constant 0 : index
        %21 = vector.load %arg10[%c0_16, %c0_17] : memref<16x50xf32, #tpu.memory_space<vmem>>, vector<16x50xf32>
        tpu.vector_store %arg10[%c0_16, %c0_17], %20 {strides = array<i32>} : memref<16x50xf32, #tpu.memory_space<vmem>>, vector<16x50xf32>,
      } else {
      }
      %c0 = arith.constant 0 : index
      %c0_4 = arith.constant 0 : index
      %c0_5 = arith.constant 0 : index
      %9 = vector.load %arg3[%c0, %c0_4, %c0_5] : memref<1x16x128xf32, #tpu.memory_space<vmem>>, vector<1x16x128xf32>
      %10 = vector.shape_cast %9 : vector<1x16x128xf32> to vector<16x128xf32>
      %c0_6 = arith.constant 0 : index
      %c0_7 = arith.constant 0 : index
      %c0_8 = arith.constant 0 : index
      %11 = vector.load %arg9[%c0_6, %c0_7, %c0_8] : memref<1x16x128xf32, #tpu.memory_space<vmem>>, vector<1x16x128xf32>
      %12 = vector.shape_cast %11 : vector<1x16x128xf32> to vector<16x128xf32>
      %13 = vector.shape_cast %10 : vector<16x128xf32> to vector<1x16x128xf32>
      tpu.vector_store %arg9[%c0_6, %c0_7, %c0_8], %13 {strides = array<i32>} : memref<1x16x128xf32, #tpu.memory_space<vmem>>, vector<1x16x128xf32>,
      %c0_9 = arith.constant 0 : index
      %c0_10 = arith.constant 0 : index
      %14 = vector.load %arg10[%c0_9, %c0_10] : memref<16x50xf32, #tpu.memory_space<vmem>>, vector<16x50xf32>
      %15 = arith.truncf %10 : vector<16x128xf32> to vector<16x128xbf16>
      %c0_11 = arith.constant 0 : index
      %c0_12 = arith.constant 0 : index
      %16 = vector.load %arg4[%c0_11, %c0_12] : memref<128x50xbf16, #tpu.memory_space<vmem>>, vector<128x50xbf16>
      %cst = arith.constant dense<0.000000e+00> : vector<16x50xf32>
      %17 = tpu.matmul %15, %16, %cst {dimension_numbers = #tpu.dot_dimension_numbers<[1], [0], [0], [1], [0, 0, 1, 1], [], []>} : vector<16x128xbf16>, vector<128x50xbf16>, vector<16x50xf32> -> vector<16x50xf32>
      %18 = arith.addf %14, %17 : vector<16x50xf32>
      %c0_13 = arith.constant 0 : index
      %c0_14 = arith.constant 0 : index
      %19 = vector.load %arg10[%c0_13, %c0_14] : memref<16x50xf32, #tpu.memory_space<vmem>>, vector<16x50xf32>
      tpu.vector_store %arg10[%c0_13, %c0_14], %18 {strides = array<i32>} : memref<16x50xf32, #tpu.memory_space<vmem>>, vector<16x50xf32>,
    } else {
    }
    %c1_i32 = arith.constant 1 : i32
    %3 = arith.cmpi eq, %arg1, %c1_i32 : i32
    %4 = arith.extui %3 : i1 to i32
    %c0_i32_1 = arith.constant 0 : i32
    %5 = arith.cmpi ne, %4, %c0_i32_1 : i32
    scf.if %5 {
      %c0_i32_2 = arith.constant 0 : i32
      %6 = arith.cmpi eq, %arg2, %c0_i32_2 : i32
      %7 = arith.extui %6 : i1 to i32
      %c0_i32_3 = arith.constant 0 : i32
      %8 = arith.cmpi ne, %7, %c0_i32_3 : i32
      scf.if %8 {
        %c0_10 = arith.constant 0 : index
        %c0_11 = arith.constant 0 : index
        %15 = vector.load %arg5[%c0_10, %c0_11] : memref<16x16xbf16, #tpu.memory_space<vmem>>, vector<16x16xbf16>
        %c0_12 = arith.constant 0 : index
        %c0_13 = arith.constant 0 : index
        %16 = vector.load %arg10[%c0_12, %c0_13] : memref<16x50xf32, #tpu.memory_space<vmem>>, vector<16x50xf32>
        %17 = arith.truncf %16 : vector<16x50xf32> to vector<16x50xbf16>
        %cst_14 = arith.constant dense<0.000000e+00> : vector<16x50xf32>
        %18 = tpu.matmul %15, %17, %cst_14 {dimension_numbers = #tpu.dot_dimension_numbers<[1], [0], [0], [1], [0, 0, 1, 1], [], []>} : vector<16x16xbf16>, vector<16x50xbf16>, vector<16x50xf32> -> vector<16x50xf32>
        %c0_15 = arith.constant 0 : index
        %c0_16 = arith.constant 0 : index
        %19 = vector.load %arg6[%c0_15, %c0_16] : memref<16x50xf32, #tpu.memory_space<vmem>>, vector<16x50xf32>
        %20 = arith.mulf %18, %19 : vector<16x50xf32>
        %c0_17 = arith.constant 0 : index
        %c0_18 = arith.constant 0 : index
        %21 = vector.load %arg7[%c0_17, %c0_18] : memref<16x50xf32, #tpu.memory_space<vmem>>, vector<16x50xf32>
        %22 = arith.addf %20, %21 : vector<16x50xf32>
        %cst_19 = arith.constant 0.000000e+00 : f32
        %23 = vector.broadcast %cst_19 : f32 to vector<16x50xf32>
        %24 = arith.maximumf %22, %23 : vector<16x50xf32>
        %25 = arith.truncf %24 : vector<16x50xf32> to vector<16x50xbf16>
        %c0_20 = arith.constant 0 : index
        %c0_21 = arith.constant 0 : index
        %26 = vector.load %arg11[%c0_20, %c0_21] : memref<16x50xbf16, #tpu.memory_space<vmem>>, vector<16x50xbf16>
        tpu.vector_store %arg11[%c0_20, %c0_21], %25 {strides = array<i32>} : memref<16x50xbf16, #tpu.memory_space<vmem>>, vector<16x50xbf16>,
      } else {
      }
      %c0 = arith.constant 0 : index
      %c0_4 = arith.constant 0 : index
      %9 = vector.load %arg11[%c0, %c0_4] : memref<16x50xbf16, #tpu.memory_space<vmem>>, vector<16x50xbf16>
      %c0_5 = arith.constant 0 : index
      %c0_6 = arith.constant 0 : index
      %10 = vector.load %arg8[%c0_5, %c0_6] : memref<50x128xbf16, #tpu.memory_space<vmem>>, vector<50x128xbf16>
      %cst = arith.constant dense<0.000000e+00> : vector<16x128xf32>
      %11 = tpu.matmul %9, %10, %cst {dimension_numbers = #tpu.dot_dimension_numbers<[1], [0], [0], [1], [0, 0, 1, 1], [], []>} : vector<16x50xbf16>, vector<50x128xbf16>, vector<16x128xf32> -> vector<16x128xf32>
      %c0_7 = arith.constant 0 : index
      %c0_8 = arith.constant 0 : index
      %c0_9 = arith.constant 0 : index
      %12 = vector.load %arg9[%c0_7, %c0_8, %c0_9] : memref<1x16x128xf32, #tpu.memory_space<vmem>>, vector<1x16x128xf32>
      %13 = vector.shape_cast %12 : vector<1x16x128xf32> to vector<16x128xf32>
      %14 = vector.shape_cast %11 : vector<16x128xf32> to vector<1x16x128xf32>
      tpu.vector_store %arg9[%c0_7, %c0_8, %c0_9], %14 {strides = array<i32>} : memref<1x16x128xf32, #tpu.memory_space<vmem>>, vector<1x16x128xf32>,
    } else {
    }
    return
  }
  func.func @transform_0(%arg0: i32, %arg1: i32, %arg2: i32) -> (i32, i32, i32) {
    %c1_i32 = arith.constant 1 : i32
    %0 = arith.subi %c1_i32, %arg1 : i32
    %1 = arith.muli %0, %arg2 : i32
    %c1_i32_0 = arith.constant 1 : i32
    %2 = arith.muli %arg1, %c1_i32_0 : i32
    %3 = arith.addi %1, %2 : i32
    %c0_i32 = arith.constant 0 : i32
    %c0_i32_1 = arith.constant 0 : i32
    return %arg0, %c0_i32, %3 : i32, i32, i32
  }
  func.func @transform_1(%arg0: i32, %arg1: i32, %arg2: i32) -> (i32, i32) {
    %c1_i32 = arith.constant 1 : i32
    %0 = arith.subi %c1_i32, %arg1 : i32
    %1 = arith.muli %0, %arg2 : i32
    %c1_i32_0 = arith.constant 1 : i32
    %2 = arith.muli %arg1, %c1_i32_0 : i32
    %3 = arith.addi %1, %2 : i32
    %c0_i32 = arith.constant 0 : i32
    %c0_i32_1 = arith.constant 0 : i32
    return %3, %c0_i32 : i32, i32
  }
  func.func @transform_2(%arg0: i32, %arg1: i32, %arg2: i32) -> (i32, i32) {
    %c0_i32 = arith.constant 0 : i32
    %c0_i32_0 = arith.constant 0 : i32
    %c0_i32_1 = arith.constant 0 : i32
    return %c0_i32, %c0_i32_0 : i32, i32
  }
  func.func @transform_3(%arg0: i32, %arg1: i32, %arg2: i32) -> (i32, i32) {
    %c0_i32 = arith.constant 0 : i32
    %c0_i32_0 = arith.constant 0 : i32
    %c0_i32_1 = arith.constant 0 : i32
    return %c0_i32, %c0_i32_0 : i32, i32
  }
  func.func @transform_4(%arg0: i32, %arg1: i32, %arg2: i32) -> (i32, i32) {
    %c0_i32 = arith.constant 0 : i32
    %c0_i32_0 = arith.constant 0 : i32
    %c0_i32_1 = arith.constant 0 : i32
    return %c0_i32, %c0_i32_0 : i32, i32
  }
  func.func @transform_5(%arg0: i32, %arg1: i32, %arg2: i32) -> (i32, i32) {
    %0 = arith.muli %arg1, %arg2 : i32
    %c0_i32 = arith.constant 0 : i32
    %c0_i32_0 = arith.constant 0 : i32
    return %c0_i32, %0 : i32, i32
  }
  func.func @transform_6(%arg0: i32, %arg1: i32, %arg2: i32) -> (i32, i32, i32) {
    %c0_i32 = arith.constant 0 : i32
    return %arg0, %arg1, %arg2 : i32, i32, i32
  }
}

</mosaic_0001>

<bundles_post_ra>
// kernel: tpu_custom_call.1
= control target key start
LH: loop header
LB: loop body
LE: loop exit
PB: predicated region body
PF: predicated region fallthrough
CT: control target
= control target key end

     0   :  { %s1508_s0 = inlined_call_operand.vmem [shape: f32[2,16,256], index: 0, kind: input, shape index: {}]   ;;  %s1509_s1 = inlined_call_operand.vmem [shape: bf16[256,50], index: 1, kind: input, shape index: {}]   ;;  %s1510_s2 = inlined_call_operand.vmem [shape: bf16[16,16], index: 2, kind: input, shape index: {}]   ;;  %s1511_s3 = inlined_call_operand.vmem [shape: f32[16,50], index: 3, kind: input, shape index: {}]   ;;  %s1512_s4 = inlined_call_operand.vmem [shape: f32[16,50], index: 4, kind: input, shape index: {}]   ;;  %s1513_s5 = inlined_call_operand.vmem [shape: bf16[50,256], index: 5, kind: input, shape index: {}]   ;;  %s1514_s6 = inlined_call_operand.hbm [shape: f32[2,32,256], index: 6, kind: output, shape index: {}]  }
   0x1   :  { %1527 = sst [smem:[#allocation19_spill]] %s1508_s0 }
   0x2   :  { %1528 = sst [smem:[#allocation20_spill]] %s1509_s1 }
   0x3   :  { %1529 = sst [smem:[#allocation21_spill]] %s1510_s2 }
   0x4   :  { %1530 = sst [smem:[#allocation22_spill]] %s1511_s3 }
   0x5   :  { %1531 = sst [smem:[#allocation23_spill]] %s1512_s4 }
   0x6   :  { %1532 = sst [smem:[#allocation24_spill]] %s1513_s5 }
   0x7   :  { %1533 = sst [smem:[#allocation25_spill]] %s1514_s6 }
   0x8   :  { %11 = vsyncpa [#allocation7], 0 }
   0x9   :  { %13 = vsyncpa [#allocation7 + $0x1], 0  ;;  %s1217_s21 = smov 0   ;;  %s1219_s22 = smov 0  }
   0xa   :  { %s1221_s23 = smov 0   ;;  %s1223_s24 = smov 0  }
   0xb   :  { %s1225_s25 = smov 0   ;;  %s1227_s26 = smov 0  }
   0xc   :  { %s1229_s27 = smov 0   ;;  %s1231_s28 = smov 0  }
   0xd   :  { %s1233_s29 = smov 0   ;;  %s1235_s30 = smov 0  }
   0xe   :  { %s1237_s7 = smov 0   ;;  %s1239_s8 = smov 0  }
   0xf   :  { %s1241_s9 = smov 0   ;;  %s1243_s10 = smov 0  }
  0x10 LB: > { %1534 = sst [smem:[#allocation9_spill]] %s1144_s26  ;;  %s31_s13 = sadd.s32 1, %s1164_s7  ;;  %s1176_s10 = sphi %s1243_s10, %s19_s10   ;;  %s1172_s9 = sphi %s1241_s9, %s1573_s9   ;;  %s1168_s8 = sphi %s1239_s8, %s1572_s8   ;;  %s1164_s7 = sphi %s1237_s7, %s1571_s7   ;;  %s1160_s30 = sphi %s1235_s30, %s1570_s30   ;;  %s1156_s29 = sphi %s1233_s29, %s1569_s29   ;;  %s1152_s28 = sphi %s1231_s28, %s1581_s28   ;;  %s1148_s27 = sphi %s1229_s27, %s1580_s27   ;;  %s1144_s26 = sphi %s1227_s26, %s1579_s26   ;;  %s1140_s25 = sphi %s1225_s25, %s1578_s25   ;;  %s1136_s24 = sphi %s1223_s24, %s1577_s24   ;;  %s1132_s23 = sphi %s1221_s23, %s1576_s23   ;;  %s1128_s22 = sphi %s1219_s22, %s1575_s22   ;;  %s1124_s21 = sphi %s1217_s21, %s1574_s21  }
  0x11   : > { %1535 = sst [smem:[#allocation10_spill]] %s1152_s28  ;;  %s34_s14 = sadd.s32 1, %s1168_s8 }
  0x12   : > { %1536 = sst [smem:[#allocation11_spill]] %s1156_s29  ;;  %p32_p0 = scmp.ge.s32.totalorder %s31_s13, 2 }
  0x13   : > { %1537 = sst [smem:[#allocation12_spill]] %s1160_s30  ;;  %s38_s15 = sadd.s32 1, %s1172_s9 }
  0x14   : > { %1538 = sst [smem:[#allocation13_spill]] %s1164_s7  ;;  %s42_s16 = ssub.s32 1, %s1168_s8 }
  0x15   : > { %1539 = sst [smem:[#allocation14_spill]] %s1168_s8  ;;  %s53_s17 = sadd.s32 1, %s1148_s27 }
  0x16   : > { %1540 = sst [smem:[#allocation15_spill]] %s1172_s9  ;;  %s1583_s13 = smov (%p32_p0, %s31_s13), 0 }
  0x17   : > { %1541 = sst [smem:[#allocation16_spill]] %s1583_s13  ;;  %s1585_s14 = smov (!%p32_p0, %s34_s14), %s1168_s8 }
  0x18   : > { %s43_s18 = smul.u32 %s1164_s7, %s42_s16  ;;  %p60_p1 = scmp.ne.s32.totalorder %s1148_s27, %s1144_s26 }
  0x19   : > { %p36_p2 = scmp.ge.s32.totalorder %s1585_s14, 2  ;;  %p61_p3 = scmp.eq.s32.totalorder %s1176_s10, 0 }
  0x1a   : > { %s1302_s19 = sadd.s32 %s1168_s8, %s43_s18  ;;  %s1306_s20 = smul.u32 %s1164_s7, %s1168_s8 }
  0x1b   : > { %s1587_s14 = smov (%p36_p2, %s1585_s14), 0  ;;  %s1589_s15 = smov (!%p36_p2, %s38_s15), %s1172_s9 }
  0x1c   : > { %1542 = sst [smem:[#allocation17_spill]] %s1587_s14  ;;  %s45_s16 = ssub.s32 1, %s1587_s14 }
  0x1d   : > { %p1314_p4 = por %p61_p3, %p60_p1  ;;  %p40_p5 = scmp.ge.s32.totalorder %s1589_s15, 2 }
  0x1e   : > { %s46_s18 = smul.u32 %s45_s16, %s1583_s13  ;;  %s176_s6 = sadd.s32 1, %s1140_s25 }
  0x1f   : > { %s172_s11 = smul.u32 %s1587_s14, %s1583_s13  ;;  %s1591_s15 = smov (%p40_p5, %s1589_s15), 0 }
  0x20   : > { %1544 = sst [smem:[#allocation18_spill]] %s1591_s15  ;;  %s47_s30 = sadd.s32 %s46_s18, %s1587_s14 }
  0x21   : > { %s173_s4 = ssub.s32 %s1306_s20, %s172_s11  ;;  %s48_s3 = ssub.s32 %s1172_s9, %s1591_s15 }
  0x22   : > { %s49_s2 = ssub.s32 %s1302_s19, %s47_s30  ;;  %p174_p6 = scmp.eq.s32.totalorder %s173_s4, 0 }
  0x23   : > { %s50_s1 = sor.u32 %s49_s2, %s48_s3  ;;  %p183_p8 = scmp.ne.s32.totalorder %s1140_s25, %s1136_s24 }
  0x24   : > { %p51_p7 = scmp.eq.s32.totalorder %s50_s1, 0  ;;  %s200_s18 = ssub.s32 %s1168_s8, %s1587_s14 }
  0x25   : > { %s1332_s16 = scalar_select %p174_p6, %s1140_s25, %s176_s6  }
  0x26   : > { %s1335_s28 = scalar_select %p51_p7, %s1148_s27, %s53_s17  }
  0x27   : > { %p1339_p9 = por %p183_p8, %p61_p3  ;;  %s201_s15 = sor.u32 %s200_s18, %s48_s3 }
  0x28   : > { %s202_s30 = ssub.s32 %s1164_s7, %s1583_s13  ;;  %s206_s26 = sadd.s32 1, %s1132_s23 }
  0x29   : > { %s203_s29 = sor.u32 %s202_s30, %s201_s15  ;;  %p216_p11 = scmp.ne.s32.totalorder %s1132_s23, %s1128_s22 }
  0x2a   : > { %p204_p10 = scmp.eq.s32.totalorder %s203_s29, 0  ;;  %s1546_s2 = sadd.s32 4294967295, %s1176_s10  }
  0x2b   : > { %p217_p12 = scmp.eq.s32.totalorder %s1546_s2, 7  ;;  %p222_p13 = scmp.ne.s32.totalorder %s1128_s22, %s1124_s21 }
  0x2c   : > { %s1355_s1 = scalar_select %p204_p10, %s1132_s23, %s206_s26  }
  0x2d   : > { %p1357_p0 = por %p217_p12, %p216_p11  ;;  %s1548_s6 = sadd.s32 4294967294, %s1176_s10  }
  0x2e   : > { %p223_p1 = scmp.eq.s32.totalorder %s1548_s6, 7  ;;  %p820_p3 = scmp.ge.s32.totalorder %s1176_s10, 8 }
  0x30   : > { %p1363_p2 = por %p223_p1, %p222_p13  ;;  %248 = sbr.rel (%p820_p3) target bundleno = 82 (0x52), region = 28 }
  0x35   : > { %251 = sbr.rel (!%p1314_p4) target bundleno = 65 (0x41), region = 32  ;;  %s253_s3 = sand.u32 (%p1314_p4), 1, %s1148_s27  }
  0x36   : > { %s822_s26 = sshll.u32 (%p1314_p4), %s1172_s9, 2  ;;  %s821_s29 = sshll.u32 (%p1314_p4), %s253_s3, 4 }
  0x37   : > { %s260_s15 = sadd.s32 (%p1314_p4), %s822_s26, %s1302_s19  ;;  %s1550_s0 = sld [smem:[#allocation19_spill]] (%p1314_p4) }
  0x38   : > { %s823_s18 = sshll.u32 (%p1314_p4), %s260_s15, 3  ;;  %s255_s14 = scalar_lea.vmem (%p1314_p4), [#allocation4], %s821_s29 }
  0x3d   : > { %s262_s6 = scalar_lea.vmem %s1550_s0, %s823_s18 }
  0x3e   : > { %v293_v0 = vld [vmem:[%s262_s6] sm:$0xff]  ;;  %v295_v1 = vld [vmem:[%s262_s6 + $0x10] sm:$0xff] }
  0x3f   : > { %294 = vst [vmem:[%s255_s14] sm:$0xff] %v293_v0 }
  0x40   : > { %296 = vst [vmem:[%s255_s14 + $0x8] sm:$0xff] %v295_v1 }
  0x41 PF: > { %317 = sbr.rel (!%p1339_p9) target bundleno = 82 (0x52), region = 74  ;;  %s319_s12 = sand.u32 (%p1339_p9), 1, %s1140_s25  }
  0x42   : > { %s824_s13 = sshll.u32 (%p1339_p9), %s1306_s20, 2  ;;  %s909_s3 = smul.u32 (%p1339_p9), 28, %s319_s12 }
  0x43   : > { %s1551_s5 = sld [smem:[#allocation24_spill]] (%p1339_p9) }
  0x44   : > { %s321_s18 = scalar_lea.vmem (%p1339_p9), [#allocation5], %s909_s3 }
  0x49   : > { %s324_s15 = scalar_lea.vmem %s1551_s5, %s824_s13 }
  0x4a   : > { %v341_v2 = vld [vmem:[%s324_s15] sm:$0xf]  ;;  %v343_v3 = vld [vmem:[%s324_s15 + $0x8] sm:$0xf]  ;;  %v345_v4 = vld [vmem:[%s324_s15 + $0x10] sm:$0xf] }
  0x4b   : > { %342 = vst [vmem:[%s321_s18] sm:$0xf] %v341_v2  ;;  %v347_v5 = vld [vmem:[%s324_s15 + $0x18] sm:$0xf]  ;;  %v349_v6 = vld [vmem:[%s324_s15 + $0x20] sm:$0xf] }
  0x4c   : > { %344 = vst [vmem:[%s321_s18 + $0x4] sm:$0xf] %v343_v3  ;;  %v351_v7 = vld [vmem:[%s324_s15 + $0x28] sm:$0xf]  ;;  %v353_v8 = vld [vmem:[%s324_s15 + $0x30] sm:$0xf] }
  0x4d   : > { %346 = vst [vmem:[%s321_s18 + $0x8] sm:$0xf] %v345_v4 }
  0x4e   : > { %348 = vst [vmem:[%s321_s18 + $0xc] sm:$0xf] %v347_v5 }
  0x4f   : > { %350 = vst [vmem:[%s321_s18 + $0x10] sm:$0xf] %v349_v6 }
  0x50   : > { %352 = vst [vmem:[%s321_s18 + $0x14] sm:$0xf] %v351_v7 }
  0x51   : > { %354 = vst [vmem:[%s321_s18 + $0x18] sm:$0xf] %v353_v8 }
  0x52 PF: > { %p825_p4 = scmp.ge.s32.totalorder %s1176_s10, 1  ;;  %p391_p5 = scmp.lt.s32.totalorder %s1176_s10, 9 }
  0x54   : > { %p392_p6 = pnand %p825_p4, %p391_p5 }
  0x55   : > { %s1552_s13 = sld [smem:[#allocation9_spill]] (!%p392_p6)  ;;  %s405_s29 = sand.u32 (!%p392_p6), 1, %s1136_s24  }
  0x56   : > { %395 = sbr.rel (%p392_p6) target bundleno = 632 (0x278), region = 115  ;;  %s1553_s14 = sld [smem:[#allocation11_spill]] (!%p392_p6) }
  0x57   : > { %s1554_s20 = sld [smem:[#allocation10_spill]] (!%p392_p6)  ;;  %s910_s2 = smul.u32 (!%p392_p6), 28, %s405_s29 }
  0x58   : > { %s443_s6 = sand.u32 (!%p392_p6), 1, %s1128_s22   ;;  %s1555_s9 = sld [smem:[#allocation20_spill]] (!%p392_p6) }
  0x59   : > { %s827_s12 = sshll.u32 (!%p392_p6), %s443_s6, 4 }
  0x5a   : > { %s1400_s24 = scalar_lea.vmem (!%p392_p6), [#allocation6], %s827_s12 }
  0x5b   : > { %s398_s11 = sand.u32 1, %s1552_s13   ;;  %s1398_s13 = scalar_lea.vmem [#allocation5], %s910_s2 }
  0x5c   : > { %s826_s30 = sshll.u32 %s398_s11, 4  ;;  %s449_s3 = ssub.s32 1, %s1553_s14 }
  0x5d   : > { %s450_s19 = smul.u32 %s1554_s20, %s449_s3  ;;  %s400_s7 = scalar_lea.vmem [#allocation4], %s826_s30 }
  0x5e   : > { %p830_p8 = scmp.ne.s32.totalorder %s1553_s14, 0 }
  0x5f   : > { %s451_s26 = sadd.s32 %s1553_s14, %s450_s19  ;;  %s1556_s11 = sld [smem:[#allocation10_spill]] (!%p830_p8) }
  0x60   : > { %s828_s15 = sshll.u32 %s451_s26, 4 }
  0x61   : > { %p453_p7 = scmp.lt.s32.totalorder %s828_s15, 31  ;;  %467 = sbr.rel (%p830_p8) target bundleno = 280 (0x118), region = 127 }
  0x63   : > { %s1593_s15 = smov (!%p453_p7, %s828_s15), 31 }
  0x64   : > { %s829_s18 = sshll.u32 %s1593_s15, 2 }
  0x65   : > { %s1396_s8 = scalar_lea.vmem %s1555_s9, %s829_s18  ;;  %p831_p9 = scmp.ne.s32.totalorder (!%p830_p8), %s1556_s11, 0 }
  0x67   : > { %471 = sbr.rel (%p831_p9) target bundleno = 111 (0x6f), region = 131 }
  0x6c   : > { %vm472_vm0 = vcmask 408576   ;;  %v1178_v9 = vmov 0.0  }
  0x6d   : > { %473 = vst.msk [vmem:[#allocation2] sm:$0xff] %vm472_vm0, %v1178_v9 }
  0x6e   : > { %474 = vst.msk [vmem:[#allocation2 + $0x8] sm:$0xff] %vm472_vm0, %v1178_v9 }
  0x6f PF: > { %v902_v10 = vld [vmem:[%s1396_s8 + $0x38] sm:$0xff]  ;;  %v901_v11 = vld [vmem:[%s1396_s8 + $0x30] sm:$0xff]  ;;  %v900_v14 = vld [vmem:[%s1396_s8 + $0x28] sm:$0xff]  ;;  %vm562_vm1 = vcmask 408576  }
  0x70   : > { %546 = vmatpush.bf16.msra.mxu0 %v902_v10  ;;  %v475_v12 = vld [vmem:[%s400_s7] sm:$0xff]  ;;  %v476_v13 = vld [vmem:[%s400_s7 + $0x8] sm:$0xff] }
  0x71   : > { %477 = vst [vmem:[%s1400_s24] sm:$0xff] %v475_v12  ;;  %v899_v15 = vld [vmem:[%s1396_s8 + $0x20] sm:$0xff]  ;;  %v898_v16 = vld [vmem:[%s1396_s8 + $0x18] sm:$0xff]  ;;  %v897_v17 = vld [vmem:[%s1396_s8 + $0x10] sm:$0xff]  ;;  %v481_v20 = vpack.c.bf16 %v476_v13, %v475_v12 }
  0x72   : > { %478 = vst [vmem:[%s1400_s24 + $0x8] sm:$0xff] %v476_v13  ;;  %v896_v18 = vld [vmem:[%s1396_s8 + $0x8] sm:$0xff]  ;;  %v895_v19 = vld [vmem:[%s1396_s8] sm:$0xff] }
  0x74   : > { %547 = vmatpush.bf16.msra.mxu0 %v901_v11  ;;  %v479_v21 = vld [vmem:[#allocation2] sm:$0xff] }
  0x75   : > { %v480_v24 = vld [vmem:[#allocation2 + $0x8] sm:$0xff] }
  0x78   : > { %548 = vmatpush.bf16.msra.mxu0 %v900_v14 }
  0x7c   : > { %549 = vmatpush.bf16.msra.mxu0 %v899_v15 }
  0x80   : > { %550 = vmatpush.bf16.msra.mxu0 %v898_v16 }
  0x84   : > { %551 = vmatpush.bf16.msra.mxu0 %v897_v17 }
  0x88   : > { %552 = vmatpush.bf16.msra.mxu0 %v896_v18 }
  0x8c   : > { %553 = vmatpush.bf16.msra.mxu0 %v895_v19 }
  0x8f   : > { %554 = vmatmul.bf16.vlgmr.msra.gmra.mxu0 %v481_v20 }
 0x10c   : > { %v555_v22 = vpop.f32.mrf.mxu0 }
 0x10d   : > { %v560_v23 = vadd.f32 %v555_v22, %v479_v21 }
 0x10f   : > { %563 = vst.msk [vmem:[#allocation2] sm:$0xff] %vm562_vm1, %v560_v23 }
 0x114   : > { %v557_v25 = vpop.f32.mrf.mxu0 }
 0x115   : > { %v561_v26 = vadd.f32 %v557_v25, %v480_v24 }
 0x117   : > { %564 = vst.msk [vmem:[#allocation2 + $0x8] sm:$0xff] %vm562_vm1, %v561_v26 }
 0x118 PF: > { %s1557_s0 = sld [smem:[#allocation11_spill]] }
 0x11e   : > { %p864_p10 = scmp.ne.s32.totalorder %s1557_s0, 1 }
 0x11f   : > { %s1558_s5 = sld [smem:[#allocation10_spill]] (!%p864_p10) }
 0x120   : > { %568 = sbr.rel (%p864_p10) target bundleno = 605 (0x25d), region = 135 }
 0x125   : > { %p865_p11 = scmp.ne.s32.totalorder %s1558_s5, 0 }
 0x126   : > { %s1559_s9 = sld [smem:[#allocation21_spill]] (!%p865_p11) }
 0x127   : > { %572 = sbr.rel (%p865_p11) target bundleno = 449 (0x1c1), region = 139  ;;  %s1560_s29 = sld [smem:[#allocation22_spill]] (!%p865_p11) }
 0x128   : > { %s1562_s3 = sld [smem:[#allocation23_spill]] (!%p865_p11) }
 0x12c   : > { %v575_v27 = vld [vmem:[#allocation2] sm:$0xff]  ;;  %v576_v28 = vld [vmem:[#allocation2 + $0x8] sm:$0xff]  ;;  %vm583_vm2 = vcmask 130048   ;;  %vm613_vm3 = vcmask 404480  }
 0x12d   : > { %v577_v29 = vpack.c.bf16 %v576_v28, %v575_v27  ;;  %v903_v30 = vld [vmem:[%s1559_s9] sm:$0xff]  ;;  %s1561_s2 = smov %s1560_s29 }
 0x12e   : > { %v601_v31 = vld [vmem:[%s1560_s29] sm:$0xff]  ;;  %v602_v37 = vld [vmem:[%s1561_s2 + $0x8] sm:$0xff] }
 0x12f   : > { %594 = vmatpush.bf16.msra.mxu0 %v577_v29  ;;  %v605_v33 = vld [vmem:[%s1562_s3] sm:$0xff]  ;;  %v606_v40 = vld [vmem:[%s1562_s3 + $0x8] sm:$0xff] }
 0x132   : > { %870 = vmatmul.msk.bf16.vlgmr.msra.gmra.mxu0 %vm583_vm2, %v903_v30 }
 0x1af   : > { %v596_v32 = vpop.f32.mrf.mxu0 }
 0x1b0   : > { %v603_v34 = vmul.f32 %v601_v31, %v596_v32 }
 0x1b2   : > { %v607_v35 = vadd.f32 %v605_v33, %v603_v34 }
 0x1b4   : > { %v609_v36 = vmax.f32 %v607_v35, 0.0 }
 0x1b6   : > { %v611_v38 = vpack.c.bf16 %v609_v36, %v609_v36 }
 0x1b7   : > { %v598_v39 = vpop.f32.mrf.mxu0 }
 0x1b8   : > { %614 = vst.msk [vmem:[#allocation3] sm:$0xf] %vm613_vm3, %v611_v38  ;;  %v604_v41 = vmul.f32 %v602_v37, %v598_v39 }
 0x1ba   : > { %v608_v42 = vadd.f32 %v606_v40, %v604_v41 }
 0x1bc   : > { %v610_v43 = vmax.f32 %v608_v42, 0.0 }
 0x1be   : > { %v612_v44 = vpack.c.bf16 %v610_v43, %v610_v43 }
 0x1c0   : > { %615 = vst.msk [vmem:[#allocation3 + $0x4] sm:$0xf] %vm613_vm3, %v612_v44 }
 0x1c1 PF: > { %v624_v45 = vld [vmem:[%s1398_s13 + $0x18] sm:$0x1]  ;;  %vm655_vm4 = vcmask 1040384   ;;  %v907_v49 = vld [vmem:[%s1398_s13 + $0x10] sm:$0xff]  ;;  %v906_v50 = vld [vmem:[%s1398_s13 + $0x8] sm:$0xff]  ;;  %vm651_vm5 = vcmask 408576  }
 0x1c2   : > { %v643_v46 = vunpack.c.l.b16 %v624_v45  ;;  %v905_v51 = vld [vmem:[%s1398_s13] sm:$0xff] }
 0x1c4   : > { %v647_v47 = vpack.c.b16 %v643_v46, %v643_v46 }
 0x1c6   : > { %v657_v48 = vsel %vm655_vm4, %v647_v47, 0 }
 0x1c7   : > { %663 = vmatpush.bf16.msra.mxu0 %v657_v48  ;;  %v904_v52 = vld [vmem:[#allocation3] sm:$0xff] }
 0x1cb   : > { %664 = vmatpush.bf16.msra.mxu0 %v907_v49 }
 0x1cf   : > { %665 = vmatpush.bf16.msra.mxu0 %v906_v50 }
 0x1d3   : > { %666 = vmatpush.bf16.msra.mxu0 %v905_v51 }
 0x1d6   : > { %887 = vmatmul.msk.bf16.vlgmr.msra.gmra.mxu0 %vm651_vm5, %v904_v52 }
 0x253   : > { %v668_v53 = vpop.f32.mrf.mxu0 }
 0x254   : > { %673 = vst [vmem:[%s1400_s24] sm:$0xff] %v668_v53 }
 0x25b   : > { %v670_v54 = vpop.f32.mrf.mxu0 }
 0x25c   : > { %674 = vst [vmem:[%s1400_s24 + $0x8] sm:$0xff] %v670_v54 }
 0x25d PF: > { %s1563_s11 = sld [smem:[#allocation11_spill]]  ;;  %s692_s13 = sshll.u32 %s1400_s24, 4  ;;  %s693_s13 = int_to_ptr.vmem [resolvable:$true] %s692_s13 }
 0x25e   : > { %s1564_s0 = sld [smem:[#allocation10_spill]]  ;;  %s676_s15 = scalar_lea.sflag [#allocation7], %s443_s6 }
 0x25f   : > { %s1565_s5 = sld [smem:[#allocation12_spill]] }
 0x260   : > { %s1566_s12 = sld [smem:[#allocation25_spill]] }
 0x263   : > { %s908_s7 = sshll.u32 %s1563_s11, 2 }
 0x264   : > { %s687_s8 = sadd.s32 %s1564_s0, %s908_s7 }
 0x265   : > { %s891_s9 = sshll.u32 %s1565_s5, 3 }
 0x266   : > { %s689_s14 = sadd.s32 %s891_s9, %s687_s8  ;;  %s1054_s24 = scalar_lea.hbm %s1566_s12, 128 }
 0x267   : > { %s892_s20 = sshll.u32 %s689_s14, 3 }
 0x268   : > { %s691_s19 = scalar_lea.hbm %s1566_s12, %s892_s20 }
 0x269   : > { %s694_s26 = sshll.u32 %s691_s19, 4  ;;  %s695_s26 = int_to_ptr.hbm [resolvable:$true] %s694_s26 }
 0x26a   : > { %s1048_s18 = sshra.s32 %s695_s26, 4  ;;  %s1049_s18 = int_to_ptr.hbm [resolvable:$true] %s1048_s18 }
 0x26b   : > { %s1050_s2 = scalar_lea.hbm %s1049_s18, 16  ;;  %p1055_p3 = scmp.lt.s32.totalorder %s1049_s18, %s1566_s12 }
 0x26c   : > { %p1051_p12 = scmp.ne.s32.totalorder %s1049_s18, %s1050_s2  ;;  %p1056_p4 = scmp.lt.s32.totalorder %s1054_s24, %s1050_s2 }
 0x26e   : > { %p1052_p13 = pnand %p1051_p12, %p1357_p0  ;;  %p1057_p5 = por %p1056_p4, %p1055_p3 }
 0x270   : > { %p1053_p1 = pneg %p1052_p13 }
 0x272   : > { %p1058_p6 = pnand %p1057_p5, %p1053_p1 }
 0x274   : > { %1061 = shalt.err (!%p1058_p6)
}
 0x275   : > { %s1179_s6 = smov 128   ;;  %s1180_s8 = smov 256  }
 0x276   : > { %s1181_s9 = smov 8  }
 0x277   : > { %911 = dma.vmem_to_hbm [thread:$0]  (%p1357_p0), %s693_s13, 256, %s695_s26, %s676_s15, %s1179_s6, %s1180_s8, %s1181_s9  }
 0x278 PF: > { %p917_p7 = scmp.ge.s32.totalorder %s1176_s10, 2  ;;  %s709_s14 = sand.u32 1, %s1124_s21  }
 0x279   : > { %s710_s20 = scalar_lea.sflag [#allocation7], %s709_s14 }
 0x27a   : > { %p914_p8 = pnand %p917_p7, %p1363_p2 }
 0x27c   : > { %p915_p9 = pneg %p914_p8 }
 0x27e   : > { %1119 = dma.done.wait (%p915_p9), %s710_s20, 256  }
 0x27f   : > { %1121 = vsyncadd (%p915_p9), %s710_s20, 4294967040  ;;  %s19_s10 = sadd.s32 1, %s1176_s10   ;;  %s1568_s4 = sld [smem:[#allocation13_spill]] }
 0x280   : > { %p1461_p10 = scmp.ge.s32.totalorder %s19_s10, 10   ;;  %s1569_s29 = sld [smem:[#allocation14_spill]] }
 0x281   : > { %s1570_s30 = sld [smem:[#allocation15_spill]]  ;;  %s1574_s21 = smov %s1128_s22 }
 0x282   : > { %s1571_s7 = sld [smem:[#allocation16_spill]]  ;;  %s1575_s22 = smov %s1132_s23 }
 0x283   : > { %s1572_s8 = sld [smem:[#allocation17_spill]]  ;;  %s1576_s23 = smov %s1355_s1 }
 0x284   : > { %s1573_s9 = sld [smem:[#allocation18_spill]]  ;;  %s1577_s24 = smov %s1140_s25 }
 0x285   : > { %s1578_s25 = smov %s1332_s16  ;;  %s1579_s26 = smov %s1148_s27 }
 0x286   : > { %s1580_s27 = smov %s1335_s28  ;;  %s1581_s28 = smov %s1568_s4 }
 0x287   :  { %18 = sbr.rel (!%p1461_p10) target bundleno = 16 (0x10), region = 190 }
 0x28c   :  { %716 = vsyncpa [#allocation7], 1 }
 0x28d   :  { %718 = vsyncpa [#allocation7 + $0x1], 1 }

</bundles_post_ra>
